<compile_context>
chip_gen: v7x
topology: tpu7x:2x2x1
jax: 0.10.0
libtpu: 0.0.40
codegen_flags: <defaults>
</compile_context>

<pallas_src>
import jax
import jax.numpy as jnp
from jax.experimental import pallas as pl
from jax.experimental.pallas import tpu as pltpu

LANES = 128
CHUNK_ROWS = 128          # 128 x 128 f32 = 16 vregs per stream per chunk
MAX_BLOCK_ROWS = 8192     # 8192 x 128 f32 = 4 MiB per input per grid step


def _num_tensorcores():
    """2 on v7x (2 TensorCores/chip via the 'parallel' axis), else 1."""
    try:
        kind = jax.devices()[0].device_kind.lower()
    except Exception:
        return 1
    return 2 if ("v7" in kind or "tpu7" in kind) else 1


def _make_dice_kernel(block_rows, nb_per_core, valid_rows):
    """Kernel factory; all sizes are baked in as Python ints."""
    n_chunks = block_rows // CHUNK_ROWS
    tail_rows = block_rows - n_chunks * CHUNK_ROWS   # multiple of 8 (maybe 0)

    def kernel(p_ref, g_ref, out_ref):
        c = pl.program_id(0)          # TensorCore / half index ("parallel")
        i = pl.program_id(1)          # block index within this half ("arbitrary")

        @pl.when(i == 0)
        def _init():
            out_ref[...] = jnp.zeros_like(out_ref)

        # Logical (unclamped) block id -- used only for masking decisions.
        b = c * nb_per_core + i
        block_row0 = b * block_rows

        def accumulate_chunk(row0, rows, masked):
            # Stream one (rows, 128) chunk: a handful of vregs live, no spills.
            p = p_ref[pl.ds(row0, rows), :].astype(jnp.float32)
            g = g_ref[pl.ds(row0, rows), :].astype(jnp.float32)
            prob = jax.nn.sigmoid(p)          # EUP; hidden under the block DMA
            if masked:
                # True select (not multiply): stale/NaN rows past the array
                # edge never reach the accumulators.
                rid = (jax.lax.broadcasted_iota(jnp.int32, (rows, LANES), 0)
                       + (block_row0 + row0))
                keep = rid < valid_rows
                prob = jnp.where(keep, prob, 0.0)
                g = jnp.where(keep, g, 0.0)
            grp = rows // 8
            # Leading-axis reductions -> pure-VPU vreg adds into resident,
            # fully aligned (8, 128) accumulator tiles (unmasked stores).
            out_ref[0, 0, :, :] += jnp.sum((prob * g).reshape(grp, 8, LANES), axis=0)
            out_ref[0, 1, :, :] += jnp.sum((prob * prob).reshape(grp, 8, LANES), axis=0)
            out_ref[0, 2, :, :] += jnp.sum((g * g).reshape(grp, 8, LANES), axis=0)

        def process_block(masked):
            if n_chunks > 0:
                @pl.loop(0, n_chunks)
                def _chunks(j):
                    row0 = pl.multiple_of(j * CHUNK_ROWS, CHUNK_ROWS)
                    accumulate_chunk(row0, CHUNK_ROWS, masked)
            if tail_rows:
                accumulate_chunk(n_chunks * CHUNK_ROWS, tail_rows, masked)

        is_full = (b + 1) * block_rows <= valid_rows

        @pl.when(is_full)
        def _full_block():            # hot path: no mask generation at all
            process_block(masked=False)

        @pl.when(jnp.logical_not(is_full))
        def _edge_block():            # last partial block / phantom block
            process_block(masked=True)

    return kernel


def _partial_sums_jax(p, g):
    p = p.astype(jnp.float32)
    g = g.astype(jnp.float32)
    prob = jax.nn.sigmoid(p)
    return jnp.sum(prob * g), jnp.sum(prob * prob), jnp.sum(g * g)


@jax.jit
def dice_loss(predict, gt):
    """Pallas equivalent of DiceLoss.forward(predict, gt) -> scalar f32."""
    n = predict.size
    p_flat = predict.reshape(-1)
    g_flat = gt.reshape(-1)

    main_rows = n // LANES            # number of full 128-lane rows
    rem = n - main_rows * LANES       # 0..127 trailing elements -> pure JAX

    if main_rows < 8:
        # Tiny input (< ~1K elements): a kernel launch isn't worth it.
        inter, sp2, sg2 = _partial_sums_jax(p_flat, g_flat)
    else:
        main = main_rows * LANES
        if rem == 0:
            p2d = p_flat.reshape(main_rows, LANES)      # zero-copy bitcast
            g2d = g_flat.reshape(main_rows, LANES)
        else:
            # TODO(synk): the prefix slice may materialize a copy for sizes not
            # divisible by 128; rare for segmentation maps and still cheaper
            # than pad+mask (the kernel never re-reads the tail).
            p2d = p_flat[:main].reshape(main_rows, LANES)
            g2d = g_flat[:main].reshape(main_rows, LANES)

        rows_aligned = (main_rows // 8) * 8     # keep every chunk 8-row aligned
        block_rows = min(MAX_BLOCK_ROWS, rows_aligned)
        num_blocks = pl.cdiv(main_rows, block_rows)
        ncores = _num_tensorcores()
        nb_per_core = pl.cdiv(num_blocks, ncores)

        kernel = _make_dice_kernel(block_rows, nb_per_core, main_rows)

        def in_map(c, i):
            # Clamp phantom blocks (odd core split) onto the last real block;
            # the kernel masks their contribution to exactly zero.
            return (jnp.minimum(c * nb_per_core + i, num_blocks - 1), 0)

        partials = pl.pallas_call(
            kernel,
            out_shape=jax.ShapeDtypeStruct((ncores, 3, 8, LANES), jnp.float32),
            grid_spec=pltpu.PrefetchScalarGridSpec(
                num_scalar_prefetch=0,
                grid=(ncores, nb_per_core),
                in_specs=[
                    pl.BlockSpec((block_rows, LANES), in_map),
                    pl.BlockSpec((block_rows, LANES), in_map),
                ],
                out_specs=pl.BlockSpec((1, 3, 8, LANES),
                                       lambda c, i: (c, 0, 0, 0)),
            ),
            compiler_params=pltpu.CompilerParams(
                dimension_semantics=("parallel", "arbitrary"),
                vmem_limit_bytes=32 * 1024 * 1024,
            ),
        )(p2d, g2d)

        sums = jnp.sum(partials, axis=(0, 2, 3))   # [inter, sum p^2, sum g^2]
        inter, sp2, sg2 = sums[0], sums[1], sums[2]

        if rem:
            ri, rp, rg = _partial_sums_jax(p_flat[main:], g_flat[main:])
            inter = inter + ri
            sp2 = sp2 + rp
            sg2 = sg2 + rg

    dice = (2.0 * inter + 1e-5) / (sp2 + sg2 + 1e-5)
    return (1.0 - dice).astype(jnp.float32)


def dice_loss_ref(predict, gt):
    """Pure-JAX reference, mirrors the PyTorch module exactly."""
    p = predict.astype(jnp.float32)
    g = gt.astype(jnp.float32)
    prob = jax.nn.sigmoid(p)
    inter = jnp.sum(prob * g)
    union = jnp.sum(prob * prob) + jnp.sum(g * g)
    return 1.0 - (2.0 * inter + 1e-5) / (union + 1e-5)


if __name__ == "__main__":
    key = jax.random.PRNGKey(0)

    def make_inputs(k, shape):
        kp, kg = jax.random.split(k)
        predict = jax.random.normal(kp, shape, dtype=jnp.float32)
        gt = jax.random.bernoulli(kg, p=0.3, shape=shape).astype(jnp.float32)
        return predict, gt

    # Primary check: small NCHW logit/mask pair (zero-copy, single-block path).
    k_main, k_a, k_b = jax.random.split(key, 3)
    predict, gt = make_inputs(k_main, (2, 4, 16, 16))
    loss = jax.block_until_ready(dice_loss(predict, gt))
    ref = dice_loss_ref(predict, gt)
    assert jnp.allclose(loss, ref, atol=1e-5, rtol=1e-5), (loss, ref)

    # Multi-chunk path (pl.loop over several 128-row chunks per block).
    p_a, g_a = make_inputs(k_a, (2, 8, 64, 64))
    loss_a = jax.block_until_ready(dice_loss(p_a, g_a))
    ref_a = dice_loss_ref(p_a, g_a)
    assert jnp.allclose(loss_a, ref_a, atol=2e-5, rtol=1e-4), (loss_a, ref_a)

    # Ragged path (masked edge block + <128-element pure-JAX remainder).
    p_b, g_b = make_inputs(k_b, (1, 3, 24, 40))
    loss_b = jax.block_until_ready(dice_loss(p_b, g_b))
    ref_b = dice_loss_ref(p_b, g_b)
    assert jnp.allclose(loss_b, ref_b, atol=2e-5, rtol=1e-4), (loss_b, ref_b)

    print("KERNEL_OK")
</pallas_src>

<mosaic_0001>
module attributes {stable_mosaic.version = 11 : i64} {
  func.func @kernel(%arg0: i32, %arg1: i32, %arg2: memref<16x128xf32, #tpu.memory_space<vmem>>, %arg3: memref<16x128xf32, #tpu.memory_space<vmem>>, %arg4: memref<1x3x8x128xf32, #tpu.memory_space<vmem>>) attributes {dimension_semantics = [#tpu.dimension_semantics<parallel>, #tpu.dimension_semantics<arbitrary>], iteration_bounds = array<i64: 1, 1>, scalar_prefetch = 0 : i64, scratch_operands = 0 : i64, tpu.core_type = #tpu.core_type<tc>, window_params = [{transform_indices = @transform_0, window_bounds = array<i64: 16, 128>}, {transform_indices = @transform_1, window_bounds = array<i64: 16, 128>}, {transform_indices = @transform_2, window_bounds = array<i64: 1, 3, 8, 128>}]} {
    %c0_i32 = arith.constant 0 : i32
    %0 = arith.cmpi eq, %arg1, %c0_i32 : i32
    %1 = arith.extui %0 : i1 to i32
    %c0_i32_0 = arith.constant 0 : i32
    %2 = arith.cmpi ne, %1, %c0_i32_0 : i32
    scf.if %2 {
      %cst = arith.constant 0.000000e+00 : f32
      %14 = vector.broadcast %cst : f32 to vector<1x3x8x128xf32>
      %c0 = arith.constant 0 : index
      %c0_6 = arith.constant 0 : index
      %c0_7 = arith.constant 0 : index
      %c0_8 = arith.constant 0 : index
      %15 = vector.load %arg4[%c0, %c0_6, %c0_7, %c0_8] : memref<1x3x8x128xf32, #tpu.memory_space<vmem>>, vector<1x3x8x128xf32>
      tpu.vector_store %arg4[%c0, %c0_6, %c0_7, %c0_8], %14 {strides = array<i32>} : memref<1x3x8x128xf32, #tpu.memory_space<vmem>>, vector<1x3x8x128xf32>,
    } else {
    }
    %c1_i32 = arith.constant 1 : i32
    %3 = arith.muli %arg0, %c1_i32 : i32
    %4 = arith.addi %3, %arg1 : i32
    %c16_i32 = arith.constant 16 : i32
    %5 = arith.muli %4, %c16_i32 : i32
    %c1_i32_1 = arith.constant 1 : i32
    %6 = arith.addi %4, %c1_i32_1 : i32
    %c16_i32_2 = arith.constant 16 : i32
    %7 = arith.muli %6, %c16_i32_2 : i32
    %c16_i32_3 = arith.constant 16 : i32
    %8 = arith.cmpi sle, %7, %c16_i32_3 : i32
    %9 = arith.extui %8 : i1 to i32
    %c0_i32_4 = arith.constant 0 : i32
    %10 = arith.cmpi ne, %9, %c0_i32_4 : i32
    scf.if %10 {
      %c0 = arith.constant 0 : index
      %c0_6 = arith.constant 0 : index
      %14 = vector.load %arg2[%c0, %c0_6] : memref<16x128xf32, #tpu.memory_space<vmem>>, vector<16x128xf32>
      %c0_7 = arith.constant 0 : index
      %c0_8 = arith.constant 0 : index
      %15 = vector.load %arg3[%c0_7, %c0_8] : memref<16x128xf32, #tpu.memory_space<vmem>>, vector<16x128xf32>
      %16 = arith.negf %14 : vector<16x128xf32>
      %17 = math.exp %16 : vector<16x128xf32>
      %cst = arith.constant 1.000000e+00 : f32
      %18 = vector.broadcast %cst : f32 to vector<16x128xf32>
      %19 = arith.addf %18, %17 : vector<16x128xf32>
      %20 = arith.divf %18, %19 : vector<16x128xf32>
      %c0_9 = arith.constant 0 : index
      %c0_10 = arith.constant 0 : index
      %c0_11 = arith.constant 0 : index
      %c0_12 = arith.constant 0 : index
      %21 = vector.load %arg4[%c0_9, %c0_10, %c0_11, %c0_12] : memref<1x3x8x128xf32, #tpu.memory_space<vmem>>, vector<1x1x8x128xf32>
      %22 = vector.shape_cast %21 : vector<1x1x8x128xf32> to vector<8x128xf32>
      %23 = arith.mulf %20, %15 : vector<16x128xf32>
      %24 = vector.shape_cast %23 : vector<16x128xf32> to vector<2x8x128xf32>
      %cst_13 = arith.constant dense<0.000000e+00> : vector<8x128xf32>
      %25 = vector.multi_reduction <add>, %24, %cst_13 [0] : vector<2x8x128xf32> to vector<8x128xf32>
      %26 = arith.addf %22, %25 : vector<8x128xf32>
      %c0_14 = arith.constant 0 : index
      %c0_15 = arith.constant 0 : index
      %c0_16 = arith.constant 0 : index
      %c0_17 = arith.constant 0 : index
      %27 = vector.load %arg4[%c0_14, %c0_15, %c0_16, %c0_17] : memref<1x3x8x128xf32, #tpu.memory_space<vmem>>, vector<1x1x8x128xf32>
      %28 = vector.shape_cast %27 : vector<1x1x8x128xf32> to vector<8x128xf32>
      %29 = vector.shape_cast %26 : vector<8x128xf32> to vector<1x1x8x128xf32>
      tpu.vector_store %arg4[%c0_14, %c0_15, %c0_16, %c0_17], %29 {strides = array<i32>} : memref<1x3x8x128xf32, #tpu.memory_space<vmem>>, vector<1x1x8x128xf32>,
      %c0_18 = arith.constant 0 : index
      %c1 = arith.constant 1 : index
      %c0_19 = arith.constant 0 : index
      %c0_20 = arith.constant 0 : index
      %30 = vector.load %arg4[%c0_18, %c1, %c0_19, %c0_20] : memref<1x3x8x128xf32, #tpu.memory_space<vmem>>, vector<1x1x8x128xf32>
      %31 = vector.shape_cast %30 : vector<1x1x8x128xf32> to vector<8x128xf32>
      %32 = arith.mulf %20, %20 : vector<16x128xf32>
      %33 = vector.shape_cast %32 : vector<16x128xf32> to vector<2x8x128xf32>
      %cst_21 = arith.constant dense<0.000000e+00> : vector<8x128xf32>
      %34 = vector.multi_reduction <add>, %33, %cst_21 [0] : vector<2x8x128xf32> to vector<8x128xf32>
      %35 = arith.addf %31, %34 : vector<8x128xf32>
      %c0_22 = arith.constant 0 : index
      %c1_23 = arith.constant 1 : index
      %c0_24 = arith.constant 0 : index
      %c0_25 = arith.constant 0 : index
      %36 = vector.load %arg4[%c0_22, %c1_23, %c0_24, %c0_25] : memref<1x3x8x128xf32, #tpu.memory_space<vmem>>, vector<1x1x8x128xf32>
      %37 = vector.shape_cast %36 : vector<1x1x8x128xf32> to vector<8x128xf32>
      %38 = vector.shape_cast %35 : vector<8x128xf32> to vector<1x1x8x128xf32>
      tpu.vector_store %arg4[%c0_22, %c1_23, %c0_24, %c0_25], %38 {strides = array<i32>} : memref<1x3x8x128xf32, #tpu.memory_space<vmem>>, vector<1x1x8x128xf32>,
      %c0_26 = arith.constant 0 : index
      %c2 = arith.constant 2 : index
      %c0_27 = arith.constant 0 : index
      %c0_28 = arith.constant 0 : index
      %39 = vector.load %arg4[%c0_26, %c2, %c0_27, %c0_28] : memref<1x3x8x128xf32, #tpu.memory_space<vmem>>, vector<1x1x8x128xf32>
      %40 = vector.shape_cast %39 : vector<1x1x8x128xf32> to vector<8x128xf32>
      %41 = arith.mulf %15, %15 : vector<16x128xf32>
      %42 = vector.shape_cast %41 : vector<16x128xf32> to vector<2x8x128xf32>
      %cst_29 = arith.constant dense<0.000000e+00> : vector<8x128xf32>
      %43 = vector.multi_reduction <add>, %42, %cst_29 [0] : vector<2x8x128xf32> to vector<8x128xf32>
      %44 = arith.addf %40, %43 : vector<8x128xf32>
      %c0_30 = arith.constant 0 : index
      %c2_31 = arith.constant 2 : index
      %c0_32 = arith.constant 0 : index
      %c0_33 = arith.constant 0 : index
      %45 = vector.load %arg4[%c0_30, %c2_31, %c0_32, %c0_33] : memref<1x3x8x128xf32, #tpu.memory_space<vmem>>, vector<1x1x8x128xf32>
      %46 = vector.shape_cast %45 : vector<1x1x8x128xf32> to vector<8x128xf32>
      %47 = vector.shape_cast %44 : vector<8x128xf32> to vector<1x1x8x128xf32>
      tpu.vector_store %arg4[%c0_30, %c2_31, %c0_32, %c0_33], %47 {strides = array<i32>} : memref<1x3x8x128xf32, #tpu.memory_space<vmem>>, vector<1x1x8x128xf32>,
    } else {
    }
    %true = arith.constant true
    %11 = arith.xori %8, %true : i1
    %12 = arith.extui %11 : i1 to i32
    %c0_i32_5 = arith.constant 0 : i32
    %13 = arith.cmpi ne, %12, %c0_i32_5 : i32
    scf.if %13 {
      %c0 = arith.constant 0 : index
      %c0_6 = arith.constant 0 : index
      %14 = vector.load %arg2[%c0, %c0_6] : memref<16x128xf32, #tpu.memory_space<vmem>>, vector<16x128xf32>
      %c0_7 = arith.constant 0 : index
      %c0_8 = arith.constant 0 : index
      %15 = vector.load %arg3[%c0_7, %c0_8] : memref<16x128xf32, #tpu.memory_space<vmem>>, vector<16x128xf32>
      %16 = arith.negf %14 : vector<16x128xf32>
      %17 = math.exp %16 : vector<16x128xf32>
      %cst = arith.constant 1.000000e+00 : f32
      %18 = vector.broadcast %cst : f32 to vector<16x128xf32>
      %19 = arith.addf %18, %17 : vector<16x128xf32>
      %20 = arith.divf %18, %19 : vector<16x128xf32>
      %21 = tpu.iota {dimensions = array<i32: 0>} : vector<16x128xi32>
      %c0_i32_9 = arith.constant 0 : i32
      %22 = arith.addi %5, %c0_i32_9 : i32
      %23 = vector.broadcast %22 : i32 to vector<16x128xi32>
      %24 = arith.addi %21, %23 : vector<16x128xi32>
      %c16_i32_10 = arith.constant 16 : i32
      %25 = vector.broadcast %c16_i32_10 : i32 to vector<16x128xi32>
      %26 = arith.cmpi slt, %24, %25 : vector<16x128xi32>
      %cst_11 = arith.constant 0.000000e+00 : f32
      %27 = vector.broadcast %cst_11 : f32 to vector<16x128xf32>
      %28 = arith.select %26, %20, %27 : vector<16x128xi1>, vector<16x128xf32>
      %cst_12 = arith.constant 0.000000e+00 : f32
      %29 = vector.broadcast %cst_12 : f32 to vector<16x128xf32>
      %30 = arith.select %26, %15, %29 : vector<16x128xi1>, vector<16x128xf32>
      %c0_13 = arith.constant 0 : index
      %c0_14 = arith.constant 0 : index
      %c0_15 = arith.constant 0 : index
      %c0_16 = arith.constant 0 : index
      %31 = vector.load %arg4[%c0_13, %c0_14, %c0_15, %c0_16] : memref<1x3x8x128xf32, #tpu.memory_space<vmem>>, vector<1x1x8x128xf32>
      %32 = vector.shape_cast %31 : vector<1x1x8x128xf32> to vector<8x128xf32>
      %33 = arith.mulf %28, %30 : vector<16x128xf32>
      %34 = vector.shape_cast %33 : vector<16x128xf32> to vector<2x8x128xf32>
      %cst_17 = arith.constant dense<0.000000e+00> : vector<8x128xf32>
      %35 = vector.multi_reduction <add>, %34, %cst_17 [0] : vector<2x8x128xf32> to vector<8x128xf32>
      %36 = arith.addf %32, %35 : vector<8x128xf32>
      %c0_18 = arith.constant 0 : index
      %c0_19 = arith.constant 0 : index
      %c0_20 = arith.constant 0 : index
      %c0_21 = arith.constant 0 : index
      %37 = vector.load %arg4[%c0_18, %c0_19, %c0_20, %c0_21] : memref<1x3x8x128xf32, #tpu.memory_space<vmem>>, vector<1x1x8x128xf32>
      %38 = vector.shape_cast %37 : vector<1x1x8x128xf32> to vector<8x128xf32>
      %39 = vector.shape_cast %36 : vector<8x128xf32> to vector<1x1x8x128xf32>
      tpu.vector_store %arg4[%c0_18, %c0_19, %c0_20, %c0_21], %39 {strides = array<i32>} : memref<1x3x8x128xf32, #tpu.memory_space<vmem>>, vector<1x1x8x128xf32>,
      %c0_22 = arith.constant 0 : index
      %c1 = arith.constant 1 : index
      %c0_23 = arith.constant 0 : index
      %c0_24 = arith.constant 0 : index
      %40 = vector.load %arg4[%c0_22, %c1, %c0_23, %c0_24] : memref<1x3x8x128xf32, #tpu.memory_space<vmem>>, vector<1x1x8x128xf32>
      %41 = vector.shape_cast %40 : vector<1x1x8x128xf32> to vector<8x128xf32>
      %42 = arith.mulf %28, %28 : vector<16x128xf32>
      %43 = vector.shape_cast %42 : vector<16x128xf32> to vector<2x8x128xf32>
      %cst_25 = arith.constant dense<0.000000e+00> : vector<8x128xf32>
      %44 = vector.multi_reduction <add>, %43, %cst_25 [0] : vector<2x8x128xf32> to vector<8x128xf32>
      %45 = arith.addf %41, %44 : vector<8x128xf32>
      %c0_26 = arith.constant 0 : index
      %c1_27 = arith.constant 1 : index
      %c0_28 = arith.constant 0 : index
      %c0_29 = arith.constant 0 : index
      %46 = vector.load %arg4[%c0_26, %c1_27, %c0_28, %c0_29] : memref<1x3x8x128xf32, #tpu.memory_space<vmem>>, vector<1x1x8x128xf32>
      %47 = vector.shape_cast %46 : vector<1x1x8x128xf32> to vector<8x128xf32>
      %48 = vector.shape_cast %45 : vector<8x128xf32> to vector<1x1x8x128xf32>
      tpu.vector_store %arg4[%c0_26, %c1_27, %c0_28, %c0_29], %48 {strides = array<i32>} : memref<1x3x8x128xf32, #tpu.memory_space<vmem>>, vector<1x1x8x128xf32>,
      %c0_30 = arith.constant 0 : index
      %c2 = arith.constant 2 : index
      %c0_31 = arith.constant 0 : index
      %c0_32 = arith.constant 0 : index
      %49 = vector.load %arg4[%c0_30, %c2, %c0_31, %c0_32] : memref<1x3x8x128xf32, #tpu.memory_space<vmem>>, vector<1x1x8x128xf32>
      %50 = vector.shape_cast %49 : vector<1x1x8x128xf32> to vector<8x128xf32>
      %51 = arith.mulf %30, %30 : vector<16x128xf32>
      %52 = vector.shape_cast %51 : vector<16x128xf32> to vector<2x8x128xf32>
      %cst_33 = arith.constant dense<0.000000e+00> : vector<8x128xf32>
      %53 = vector.multi_reduction <add>, %52, %cst_33 [0] : vector<2x8x128xf32> to vector<8x128xf32>
      %54 = arith.addf %50, %53 : vector<8x128xf32>
      %c0_34 = arith.constant 0 : index
      %c2_35 = arith.constant 2 : index
      %c0_36 = arith.constant 0 : index
      %c0_37 = arith.constant 0 : index
      %55 = vector.load %arg4[%c0_34, %c2_35, %c0_36, %c0_37] : memref<1x3x8x128xf32, #tpu.memory_space<vmem>>, vector<1x1x8x128xf32>
      %56 = vector.shape_cast %55 : vector<1x1x8x128xf32> to vector<8x128xf32>
      %57 = vector.shape_cast %54 : vector<8x128xf32> to vector<1x1x8x128xf32>
      tpu.vector_store %arg4[%c0_34, %c2_35, %c0_36, %c0_37], %57 {strides = array<i32>} : memref<1x3x8x128xf32, #tpu.memory_space<vmem>>, vector<1x1x8x128xf32>,
    } else {
    }
    return
  }
  func.func @transform_0(%arg0: i32, %arg1: i32) -> (i32, i32) {
    %c1_i32 = arith.constant 1 : i32
    %0 = arith.muli %arg0, %c1_i32 : i32
    %1 = arith.addi %0, %arg1 : i32
    %c0_i32 = arith.constant 0 : i32
    %2 = arith.minsi %1, %c0_i32 : i32
    %c0_i32_0 = arith.constant 0 : i32
    %c0_i32_1 = arith.constant 0 : i32
    return %2, %c0_i32_0 : i32, i32
  }
  func.func @transform_1(%arg0: i32, %arg1: i32) -> (i32, i32) {
    %c1_i32 = arith.constant 1 : i32
    %0 = arith.muli %arg0, %c1_i32 : i32
    %1 = arith.addi %0, %arg1 : i32
    %c0_i32 = arith.constant 0 : i32
    %2 = arith.minsi %1, %c0_i32 : i32
    %c0_i32_0 = arith.constant 0 : i32
    %c0_i32_1 = arith.constant 0 : i32
    return %2, %c0_i32_0 : i32, i32
  }
  func.func @transform_2(%arg0: i32, %arg1: i32) -> (i32, i32, i32, i32) {
    %c0_i32 = arith.constant 0 : i32
    %c0_i32_0 = arith.constant 0 : i32
    %c0_i32_1 = arith.constant 0 : i32
    %c0_i32_2 = arith.constant 0 : i32
    return %arg0, %c0_i32, %c0_i32_0, %c0_i32_1 : i32, i32, i32, i32
  }
}

</mosaic_0001>

<bundles_post_ra>
// kernel: dice_loss.1
= control target key start
LH: loop header
LB: loop body
LE: loop exit
PB: predicated region body
PF: predicated region fallthrough
CT: control target
= control target key end

     0   :  { %s251_s0 = inlined_call_operand.vmem [shape: f32[16,128], index: 0, kind: input, shape index: {}]   ;;  %s252_s1 = inlined_call_operand.vmem [shape: f32[16,128], index: 1, kind: input, shape index: {}]   ;;  %s253_s2 = inlined_call_operand.vmem [shape: f32[1,3,8,128], index: 2, kind: output, shape index: {}]  }
   0x1   :  { %v90_v0 = vld [vmem:[%s251_s0] sm:$0xff]  ;;  %v91_v1 = vld [vmem:[%s251_s0 + $0x8] sm:$0xff] }
   0x2   :  { %v92_v2 = vld [vmem:[%s252_s1] sm:$0xff]  ;;  %v93_v3 = vld [vmem:[%s252_s1 + $0x8] sm:$0xff]  ;;  %v194_v4 = vmul.f32 -1.442695, %v90_v0  ;;  %v195_v5 = vmul.f32 -1.442695, %v91_v1 }
   0x3   :  { %v121_v6 = vmul.f32 %v92_v2, %v92_v2  ;;  %v122_v7 = vmul.f32 %v93_v3, %v93_v3 }
   0x4   :  { %207 = vpow2.f32 %v194_v4 }
   0x5   :  { %209 = vpow2.f32 %v195_v5  ;;  %v123_v8 = vadd.f32 %v122_v7, %v121_v6 }
   0x7   :  { %199 = vst [vmem:[%s253_s2 + $0x10] sm:$0xff] %v123_v8 }
   0xe   :  { %v208_v9 = vpop.eup %207 }
   0xf   :  { %v210_v10 = vpop.eup %209  ;;  %v100_v11 = vadd.f32 1.0, %v208_v9 }
  0x10   :  { %v101_v12 = vadd.f32 1.0, %v210_v10 }
  0x11   :  { %211 = vrcp.f32 %v100_v11 }
  0x12   :  { %213 = vrcp.f32 %v101_v12 }
  0x1b   :  { %v212_v13 = vpop.eup %211 }
  0x1c   :  { %v214_v14 = vpop.eup %213  ;;  %v107_v15 = vmul.f32 %v212_v13, %v92_v2  ;;  %v114_v16 = vmul.f32 %v212_v13, %v212_v13 }
  0x1d   :  { %v108_v17 = vmul.f32 %v214_v14, %v93_v3  ;;  %v115_v18 = vmul.f32 %v214_v14, %v214_v14 }
  0x1f   :  { %v109_v19 = vadd.f32 %v108_v17, %v107_v15  ;;  %v116_v20 = vadd.f32 %v115_v18, %v114_v16 }
  0x21   :  { %111 = vst [vmem:[%s253_s2] sm:$0xff] %v109_v19  ;;  %197 = vst [vmem:[%s253_s2 + $0x8] sm:$0xff] %v116_v20 }

</bundles_post_ra>
